<compile_context>
chip_gen: v7x
topology: tpu7x:2x2x1
jax: 0.10.0
libtpu: 0.0.40
codegen_flags: <defaults>
</compile_context>

<pallas_src>
import functools

import jax
import jax.numpy as jnp
from jax.experimental import pallas as pl
from jax.experimental.pallas import tpu as pltpu


def _s1x1_kernel(x_ref, w_ref, o_ref):
    # x_ref: (tile_n, m_in)   w_ref: (m_in, m_out)   o_ref: (tile_n, m_out)
    o_ref[...] = jnp.dot(
        x_ref[...], w_ref[...], preferred_element_type=jnp.float32
    ).astype(o_ref.dtype)


def _choose_tile_n(n, m_in, m_out, dtype_bytes, vmem_budget_bytes=8 << 20):
    """Largest multiple-of-8 row tile whose double-buffered blocks fit the budget."""
    per_row = 2 * (m_in + m_out) * dtype_bytes  # in + out blocks, double buffered
    max_tile = max(8, vmem_budget_bytes // max(per_row, 1))
    max_tile = (max_tile // 8) * 8
    n_pad8 = ((n + 7) // 8) * 8
    return max(8, min(max_tile, n_pad8))


@functools.partial(jax.jit, static_argnames=("tile_n",))
def _s1x1_matmul(features, transform, tile_n):
    """features: (B, N_pad, m_in), transform: (B, m_in, m_out); N_pad % tile_n == 0."""
    B, n_pad, m_in = features.shape
    m_out = transform.shape[-1]
    grid = (B, n_pad // tile_n)
    return pl.pallas_call(
        _s1x1_kernel,
        out_shape=jax.ShapeDtypeStruct((B, n_pad, m_out), features.dtype),
        grid_spec=pltpu.PrefetchScalarGridSpec(
            num_scalar_prefetch=0,
            grid=grid,
            in_specs=[
                pl.BlockSpec(
                    (pl.Squeezed(), tile_n, m_in), lambda b, i: (b, i, 0)
                ),
                # Weight block index is constant across the row-tile axis, so it
                # stays resident in VMEM while i advances.
                pl.BlockSpec(
                    (pl.Squeezed(), m_in, m_out), lambda b, i: (b, 0, 0)
                ),
            ],
            out_specs=pl.BlockSpec(
                (pl.Squeezed(), tile_n, m_out), lambda b, i: (b, i, 0)
            ),
        ),
        compiler_params=pltpu.CompilerParams(
            dimension_semantics=("parallel", "parallel"),
            vmem_limit_bytes=32 << 20,  # explicit: safe on v7x's smaller VMEM too
        ),
    )(features, transform)


def s1x1_so3_forward(features, transform):
    """Pallas implementation of S1x1SO3.forward.

    features:  (B, N, m_in)
    transform: (B, m_in, m_out)
    returns:   (B, N, m_out) == matmul(features, transform)
    """
    B, N, m_in = features.shape
    m_out = transform.shape[-1]
    dtype_bytes = jnp.dtype(features.dtype).itemsize
    tile_n = _choose_tile_n(N, m_in, m_out, dtype_bytes)
    n_pad = pl.cdiv(N, tile_n) * tile_n
    if n_pad != N:
        features = jnp.pad(features, ((0, 0), (0, n_pad - N), (0, 0)))
    out = _s1x1_matmul(features, transform, tile_n)
    return out[:, :N, :]


def s1x1_so3_reference(features, transform):
    """Pure-JAX reference mirroring torch.matmul(features, transform)."""
    return jnp.matmul(features, transform)


if __name__ == "__main__":
    key = jax.random.PRNGKey(0)

    # Fiber multiplicities implied by the module:
    #   m_in  = f_in.structure_dict[0]
    #   m_out = f_out.structure_dict[0] * 4 * 2
    batch_size, N = 2, 16
    m_in = 4
    m_out = 4 * 4 * 2  # f_out[0] = 4

    key, kx, kw = jax.random.split(key, 3)
    features = jax.random.normal(kx, (batch_size, N, m_in), dtype=jnp.float32)
    # nn.Parameter(torch.randn(B, m_in, m_out) / sqrt(m_in)) -> synthetic init
    transform = (
        jax.random.normal(kw, (batch_size, m_in, m_out), dtype=jnp.float32)
        / (m_in ** 0.5)
    )

    out = s1x1_so3_forward(features, transform)
    out = jax.block_until_ready(out)

    ref = s1x1_so3_reference(features, transform)
    assert out.shape == (batch_size, N, m_out)
    assert jnp.allclose(out, ref, atol=1e-5, rtol=1e-5), "mismatch vs reference"

    print("KERNEL_OK")
</pallas_src>

<mosaic_0001>
module attributes {stable_mosaic.version = 11 : i64} {
  func.func @_s1x1_kernel(%arg0: i32, %arg1: i32, %arg2: memref<1x16x4xf32, #tpu.memory_space<vmem>>, %arg3: memref<1x4x32xf32, #tpu.memory_space<vmem>>, %arg4: memref<1x16x32xf32, #tpu.memory_space<vmem>>) attributes {dimension_semantics = [#tpu.dimension_semantics<parallel>, #tpu.dimension_semantics<parallel>], iteration_bounds = array<i64: 2, 1>, scalar_prefetch = 0 : i64, scratch_operands = 0 : i64, tpu.core_type = #tpu.core_type<tc>, window_params = [{transform_indices = @transform_0, window_bounds = array<i64: 1, 16, 4>}, {transform_indices = @transform_1, window_bounds = array<i64: 1, 4, 32>}, {transform_indices = @transform_2, window_bounds = array<i64: 1, 16, 32>}]} {
    %c0 = arith.constant 0 : index
    %c0_0 = arith.constant 0 : index
    %c0_1 = arith.constant 0 : index
    %0 = vector.load %arg2[%c0, %c0_0, %c0_1] : memref<1x16x4xf32, #tpu.memory_space<vmem>>, vector<1x16x4xf32>
    %1 = vector.shape_cast %0 : vector<1x16x4xf32> to vector<16x4xf32>
    %c0_2 = arith.constant 0 : index
    %c0_3 = arith.constant 0 : index
    %c0_4 = arith.constant 0 : index
    %2 = vector.load %arg3[%c0_2, %c0_3, %c0_4] : memref<1x4x32xf32, #tpu.memory_space<vmem>>, vector<1x4x32xf32>
    %3 = vector.shape_cast %2 : vector<1x4x32xf32> to vector<4x32xf32>
    %cst = arith.constant dense<0.000000e+00> : vector<16x32xf32>
    %4 = tpu.matmul %1, %3, %cst {dimension_numbers = #tpu.dot_dimension_numbers<[1], [0], [0], [1], [0, 0, 1, 1], [], []>} : vector<16x4xf32>, vector<4x32xf32>, vector<16x32xf32> -> vector<16x32xf32>
    %c0_5 = arith.constant 0 : index
    %c0_6 = arith.constant 0 : index
    %c0_7 = arith.constant 0 : index
    %5 = vector.load %arg4[%c0_5, %c0_6, %c0_7] : memref<1x16x32xf32, #tpu.memory_space<vmem>>, vector<1x16x32xf32>
    %6 = vector.shape_cast %5 : vector<1x16x32xf32> to vector<16x32xf32>
    %7 = vector.shape_cast %4 : vector<16x32xf32> to vector<1x16x32xf32>
    tpu.vector_store %arg4[%c0_5, %c0_6, %c0_7], %7 {strides = array<i32>} : memref<1x16x32xf32, #tpu.memory_space<vmem>>, vector<1x16x32xf32>,
    return
  }
  func.func @transform_0(%arg0: i32, %arg1: i32) -> (i32, i32, i32) {
    %c0_i32 = arith.constant 0 : i32
    %c0_i32_0 = arith.constant 0 : i32
    return %arg0, %arg1, %c0_i32 : i32, i32, i32
  }
  func.func @transform_1(%arg0: i32, %arg1: i32) -> (i32, i32, i32) {
    %c0_i32 = arith.constant 0 : i32
    %c0_i32_0 = arith.constant 0 : i32
    %c0_i32_1 = arith.constant 0 : i32
    return %arg0, %c0_i32, %c0_i32_0 : i32, i32, i32
  }
  func.func @transform_2(%arg0: i32, %arg1: i32) -> (i32, i32, i32) {
    %c0_i32 = arith.constant 0 : i32
    %c0_i32_0 = arith.constant 0 : i32
    return %arg0, %arg1, %c0_i32 : i32, i32, i32
  }
}

</mosaic_0001>

<bundles_post_ra>
// kernel: _s1x1_matmul.1
= control target key start
LH: loop header
LB: loop body
LE: loop exit
PB: predicated region body
PF: predicated region fallthrough
CT: control target
= control target key end

     0   :  { %7 = vsyncpa [#allocation3], 0  ;;  %s689_s0 = inlined_call_operand.vmem [shape: f32[2,16,4], index: 0, kind: input, shape index: {}]   ;;  %s690_s1 = inlined_call_operand.vmem [shape: f32[2,4,32], index: 1, kind: input, shape index: {}]   ;;  %s691_s2 = inlined_call_operand.hbm [shape: f32[2,16,32], index: 2, kind: output, shape index: {}]  }
   0x1   :  { %9 = vsyncpa [#allocation3 + $0x1], 0  ;;  %s571_s9 = smov 0   ;;  %s573_s10 = smov 0  }
   0x2   :  { %s575_s11 = smov 0   ;;  %s577_s12 = smov 0  }
   0x3   :  { %s579_s13 = smov 0   ;;  %s581_s14 = smov 0  }
   0x4 LB: > { %s389_s15 = sadd.s32 4294967295, %s551_s14   ;;  %s390_s16 = sadd.s32 4294967294, %s551_s14   ;;  %s551_s14 = sphi %s581_s14, %s15_s14   ;;  %s547_s13 = sphi %s579_s13, %s698_s13   ;;  %s543_s12 = sphi %s577_s12, %s697_s12   ;;  %s539_s11 = sphi %s575_s11, %s696_s11   ;;  %s535_s10 = sphi %s573_s10, %s695_s10   ;;  %s531_s9 = sphi %s571_s9, %s694_s9  }
   0x5   : > { %s27_s17 = sadd.s32 1, %s547_s13  ;;  %s90_s18 = sadd.s32 1, %s539_s11 }
   0x6   : > { %p29_p0 = scmp.ge.s32.totalorder %s27_s17, 2  ;;  %p100_p1 = scmp.ne.s32.totalorder %s539_s11, %s535_s10 }
   0x7   : > { %p101_p2 = scmp.eq.s32.totalorder %s389_s15, 1  ;;  %p106_p3 = scmp.ne.s32.totalorder %s535_s10, %s531_s9 }
   0x8   : > { %s700_s17 = smov (%p29_p0, %s27_s17), 0  ;;  %p107_p5 = scmp.eq.s32.totalorder %s390_s16, 1 }
   0x9   : > { %p611_p4 = por %p101_p2, %p100_p1  ;;  %s85_s20 = ssub.s32 %s547_s13, %s700_s17 }
   0xa   : > { %p393_p6 = scmp.ge.s32.totalorder %s551_s14, 1  ;;  %p88_p7 = scmp.eq.s32.totalorder %s85_s20, 0 }
   0xb   : > { %p618_p8 = por %p107_p5, %p106_p3  ;;  %p145_p9 = scmp.lt.s32.totalorder %s551_s14, 3 }
   0xc   : > { %s624_s22 = scalar_select %p88_p7, %s539_s11, %s90_s18  }
   0xd   : > { %p146_p10 = pnand %p393_p6, %p145_p9 }
   0xe   : > { %p176_p11 = scmp.lt.s32.totalorder (!%p146_p10), %s543_s12, 1  ;;  %vm200_vm0 = vcmask (!%p146_p10), 1043456   ;;  %vm193_vm1 = vcmask (!%p146_p10), 31744   ;;  %s172_s4 = sand.u32 (!%p146_p10), 1, %s535_s10   ;;  %vm279_vm2 = vcmask (!%p146_p10), 261120  }
   0xf   : > { %149 = sbr.rel (%p146_p10) target bundleno = 257 (0x101), region = 28  ;;  %s394_s5 = sshll.u32 (!%p146_p10), %s172_s4, 4 }
  0x10   : > { %s174_s6 = scalar_lea.vmem (!%p146_p10), [#allocation2], %s394_s5  ;;  %s407_s8 = sshll.u32 (!%p146_p10), %s543_s12, 8 }
  0x11   : > { %s298_s7 = sshll.u32 (!%p146_p10), %s174_s6, 4  ;;  %s641_s18 = scalar_lea.hbm (!%p146_p10), %s691_s2, %s407_s8  ;;  %s636_s7 = int_to_ptr.vmem [resolvable:$true] %s298_s7 }
  0x12   : > { %s643_s20 = scalar_lea.sflag (!%p146_p10), [#allocation3], %s172_s4 }
  0x16   : > { %s177_s23 = scalar_select %p176_p11, %s543_s12, 1 }
  0x17   : > { %s553_s12 = smov [#allocation2]  }
  0x18   : > { %s397_s24 = sshll.u32 %s177_s23, 2  ;;  %s406_s25 = sshll.u32 %s177_s23, 4 }
  0x19   : > { %s188_s28 = scalar_lea.vmem %s690_s1, %s397_s24  ;;  %s183_s3 = scalar_lea.vmem %s689_s0, %s406_s25 }
  0x1a   : > { %v192_v0 = vld [vmem:[%s188_s28] sm:$0xf]  ;;  %v191_v2 = vld [vmem:[%s183_s3 + $0x8] sm:$0xff]  ;;  %s473_s23 = scalar_lea.vmem %s636_s7, 256  ;;  %s477_s24 = sshll.u32 %s553_s12, 4  ;;  %s478_s24 = int_to_ptr.vmem [resolvable:$false] %s477_s24 }
  0x1b   : > { %v190_v1 = vld [vmem:[%s183_s3] sm:$0xff]  ;;  %411 = vmatprep.subr.msk.mxu0 %vm200_vm0, %v192_v0  ;;  %p474_p12 = scmp.ne.s32.totalorder %s636_s7, %s473_s23  ;;  %s479_s25 = scalar_lea.vmem %s478_s24, 512 }
  0x1c   : > { %413 = vmatprep.mubr.msk.f32.mxu0 %vm193_vm1, %v190_v1  ;;  %412 = vmatpush3.msk.msra.mxu0 %vm200_vm0, %v192_v0  ;;  %p480_p1 = scmp.lt.s32.totalorder %s636_s7, %s478_s24  ;;  %p481_p2 = scmp.lt.s32.totalorder %s479_s25, %s473_s23 }
  0x1d   : > { %414 = vmatmul.mubr.msk.f32.vlgmr.msra.gmra.mrb[0].mxu0 %vm193_vm1, %v191_v2  ;;  %p475_p13 = pnand %p474_p12, %p611_p4 }
  0x1e   : > { %p482_p3 = por %p481_p2, %p480_p1 }
  0x1f   : > { %p476_p0 = pneg %p475_p13 }
  0x21   : > { %p483_p5 = pnand %p482_p3, %p476_p0 }
  0xf0   : > { %v415_v3 = vpop.f32.mrb[0].mxu0 }
  0xf1   : > { %281 = vst.msk [vmem:[%s174_s6 + $0x8] sm:$0xff] %vm279_vm2, %v415_v3  ;;  %v270_v4 = vpop.f32.mrb[1].mxu0 }
  0xf2   : > { %280 = vst.msk [vmem:[%s174_s6] sm:$0xff] %vm279_vm2, %v270_v4 }
  0xf3   : > { %486 = shalt.err (!%p483_p5)
}
  0xf4   : > { %s487_s26 = scalar_lea.hbm %s641_s18, 256  ;;  %s491_s29 = scalar_lea.hbm %s691_s2, 512 }
  0xf5   : > { %p488_p6 = scmp.ne.s32.totalorder %s641_s18, %s487_s26  ;;  %p492_p10 = scmp.lt.u32.totalorder %s641_s18, %s691_s2 }
  0xf6   : > { %p493_p11 = scmp.lt.u32.totalorder %s491_s29, %s487_s26  ;;  %p495_p13 = scmp.lt.u32.totalorder %s487_s26, %s641_s18 }
  0xf7   : > { %p489_p7 = pnand %p488_p6, %p611_p4 }
  0xf8   : > { %p494_p12 = por %p493_p11, %p492_p10 }
  0xf9   : > { %p490_p9 = pneg %p489_p7 }
  0xfa   : > { %p496_p0 = por %p495_p13, %p494_p12 }
  0xfc   : > { %p497_p1 = pnand %p496_p0, %p490_p9 }
  0xfe   : > { %500 = shalt.err (!%p497_p1)
}
  0xff   : > { %s554_s4 = smov 128   ;;  %s555_s5 = smov 8  }
 0x100   : > { %416 = dma.vmem_to_hbm [thread:$0]  (%p611_p4), %s636_s7, 256, %s641_s18, %s643_s20, %s554_s4, %s554_s4, %s555_s5  }
 0x101 PF: > { %p422_p2 = scmp.ge.s32.totalorder %s551_s14, 2  ;;  %s313_s6 = sand.u32 1, %s531_s9  }
 0x102   : > { %s314_s8 = scalar_lea.sflag [#allocation3], %s313_s6 }
 0x103   : > { %p419_p3 = pnand %p422_p2, %p618_p8 }
 0x105   : > { %526 = dma.done.wait (!%p419_p3), %s314_s8, 256  }
 0x106   : > { %528 = vsyncadd (!%p419_p3), %s314_s8, 4294967040  ;;  %s15_s14 = sadd.s32 1, %s551_s14   ;;  %s694_s9 = smov %s535_s10 }
 0x107   : > { %p12_p5 = scmp.ge.s32.totalorder %s15_s14, 4   ;;  %s695_s10 = smov %s539_s11 }
 0x108   : > { %s696_s11 = smov %s624_s22  ;;  %s697_s12 = smov %s547_s13 }
 0x109   : > { %s698_s13 = smov %s700_s17  ;;  %14 = sbr.rel (!%p12_p5) target bundleno = 4 (0x4), region = 66 }
 0x110   :  { %319 = vsyncpa [#allocation3], 1 }
 0x111   :  { %321 = vsyncpa [#allocation3 + $0x1], 1 }

</bundles_post_ra>
